<compile_context>
chip_gen: v6e
topology: v6e:2x2x1
jax: 0.10.0
libtpu: 0.0.40
codegen_flags: <defaults>
</compile_context>

<pallas_src>
import functools

import jax
import jax.numpy as jnp
from jax.experimental import pallas as pl
from jax.experimental.pallas import tpu as pltpu


_LANE = 128                     # lane width: pad feature dims to this
_TM = 128                       # node-row tile (128-row M tiles, v5e MXU-native)
_TK = 128                       # N-contraction tile (lane dim of adj block)
_TE = 128                       # edge tile for the MLP head
_VMEM_LIMIT = 32 * 1024 * 1024  # explicit budget, safe on v7x (64 MiB physical)


def _round_up(v, m):
    return (v + m - 1) // m * m


def _pad2(a, rows, cols):
    return jnp.pad(a, ((0, rows - a.shape[0]), (0, cols - a.shape[1])))


# ---------------------------------------------------------------------------
# Kernel 1: one SAGEConv layer (mean aggregation as a tiled dense matmul).
#     out = relu( (adj @ feat) @ W_l + feat_root @ W_r + b )
# Grid: (row blocks "parallel", contraction blocks "arbitrary").
# ---------------------------------------------------------------------------
def _sage_layer_kernel(adj_ref, nb_ref, root_ref, wl_ref, wr_ref, b_ref,
                       out_ref, acc_ref):
    k = pl.program_id(1)

    @pl.when(k == 0)
    def _():
        acc_ref[...] = jnp.zeros_like(acc_ref)

    # Mean-aggregation partial sum: bf16 x bf16 on the MXU, f32 accumulation.
    acc_ref[...] += jnp.dot(
        adj_ref[...], nb_ref[...].astype(jnp.bfloat16),
        preferred_element_type=jnp.float32)

    @pl.when(k == pl.num_programs(1) - 1)
    def _():
        h = (jnp.dot(acc_ref[...], wl_ref[...],
                     preferred_element_type=jnp.float32)
             + jnp.dot(root_ref[...], wr_ref[...],
                       preferred_element_type=jnp.float32)
             + b_ref[...])
        out_ref[...] = jnp.maximum(h, 0.0)   # relu in f32 on the VPU


def _sage_layer(adj, feat, wl, wr, b):
    n_pad = adj.shape[0]
    fp = feat.shape[1]
    hp = wl.shape[1]
    grid = (n_pad // _TM, n_pad // _TK)

    cost = pl.CostEstimate(
        flops=2 * n_pad * n_pad * fp + 4 * n_pad * fp * hp,
        transcendentals=0,
        bytes_accessed=(adj.size * adj.dtype.itemsize
                        + 2 * feat.size * feat.dtype.itemsize
                        + (2 * fp * hp + hp) * 4
                        + n_pad * hp * 4),
    )

    return pl.pallas_call(
        _sage_layer_kernel,
        out_shape=jax.ShapeDtypeStruct((n_pad, hp), jnp.float32),
        grid_spec=pltpu.PrefetchScalarGridSpec(
            num_scalar_prefetch=0,
            grid=grid,
            in_specs=[
                pl.BlockSpec((_TM, _TK), lambda i, k: (i, k)),   # adj tile (bf16)
                pl.BlockSpec((_TK, fp), lambda i, k: (k, 0)),    # neighbour feats
                pl.BlockSpec((_TM, fp), lambda i, k: (i, 0)),    # root feats
                pl.BlockSpec((fp, hp), lambda i, k: (0, 0)),     # W_l
                pl.BlockSpec((fp, hp), lambda i, k: (0, 0)),     # W_r
                pl.BlockSpec((1, hp), lambda i, k: (0, 0)),      # bias
            ],
            out_specs=pl.BlockSpec((_TM, hp), lambda i, k: (i, 0)),
            scratch_shapes=[pltpu.VMEM((_TM, fp), jnp.float32)],
        ),
        compiler_params=pltpu.CompilerParams(
            dimension_semantics=("parallel", "arbitrary"),
            vmem_limit_bytes=_VMEM_LIMIT),
        cost_estimate=cost,
    )(adj, feat, feat, wl, wr, b)


# ---------------------------------------------------------------------------
# Kernel 2: edge MLP head.
#     e      = relu( h2[src] @ W1s + h2[dst] @ W1d + b1 )
#     out    = log_softmax( e @ W2 + b2 )     (padded class lanes masked out)
# Grid: edge blocks, "parallel".
# ---------------------------------------------------------------------------
def _edge_head_kernel(num_classes, es_ref, ed_ref, w1s_ref, w1d_ref, b1_ref,
                      w2_ref, b2_ref, out_ref):
    e = (jnp.dot(es_ref[...], w1s_ref[...], preferred_element_type=jnp.float32)
         + jnp.dot(ed_ref[...], w1d_ref[...], preferred_element_type=jnp.float32)
         + b1_ref[...])
    e = jnp.maximum(e, 0.0)
    logits = (jnp.dot(e, w2_ref[...], preferred_element_type=jnp.float32)
              + b2_ref[...])
    # Mask padded class lanes so they do not contribute to the log-softmax.
    col = jax.lax.broadcasted_iota(jnp.int32, logits.shape, dimension=1)
    logits = jnp.where(col < num_classes, logits, -1e30)
    m = jnp.max(logits, axis=1, keepdims=True)
    z = logits - m
    lse = jnp.log(jnp.sum(jnp.exp(z), axis=1, keepdims=True))
    out_ref[...] = (z - lse).astype(out_ref.dtype)


def _edge_head(e_src, e_dst, w1s, w1d, b1, w2, b2, num_classes):
    e_pad, hp = e_src.shape
    cp = w2.shape[1]
    grid = (e_pad // _TE,)

    cost = pl.CostEstimate(
        flops=4 * e_pad * hp * hp + 2 * e_pad * hp * cp,
        transcendentals=e_pad * (cp + 1),
        bytes_accessed=(2 * e_pad * hp * 4
                        + (2 * hp * hp + hp * cp + hp + cp) * 4
                        + e_pad * cp * 4),
    )

    return pl.pallas_call(
        functools.partial(_edge_head_kernel, num_classes),
        out_shape=jax.ShapeDtypeStruct((e_pad, cp), jnp.float32),
        grid_spec=pltpu.PrefetchScalarGridSpec(
            num_scalar_prefetch=0,
            grid=grid,
            in_specs=[
                pl.BlockSpec((_TE, hp), lambda i: (i, 0)),   # h2[src] rows
                pl.BlockSpec((_TE, hp), lambda i: (i, 0)),   # h2[dst] rows
                pl.BlockSpec((hp, hp), lambda i: (0, 0)),    # fc1_w (src half)
                pl.BlockSpec((hp, hp), lambda i: (0, 0)),    # fc1_w (dst half)
                pl.BlockSpec((1, hp), lambda i: (0, 0)),     # fc1_b
                pl.BlockSpec((hp, cp), lambda i: (0, 0)),    # fc2_w
                pl.BlockSpec((1, cp), lambda i: (0, 0)),     # fc2_b
            ],
            out_specs=pl.BlockSpec((_TE, cp), lambda i: (i, 0)),  # lane-dense out
        ),
        compiler_params=pltpu.CompilerParams(
            dimension_semantics=("parallel",),
            vmem_limit_bytes=_VMEM_LIMIT),
        cost_estimate=cost,
    )(e_src, e_dst, w1s, w1d, b1, w2, b2)


# ---------------------------------------------------------------------------
# Wrapper (plain-JAX glue: padding, adjacency build, endpoint gather).
# ---------------------------------------------------------------------------
def graphsage2_forward(x, edge_index, params):
    """x: [N, F] float32, edge_index: [2, E] int32 (row 0 = src, row 1 = dst)."""
    n, f = x.shape
    e = edge_index.shape[1]
    h = params["wl1"].shape[1]
    c = params["fc2_w"].shape[1]

    n_pad = _round_up(n, max(_TM, _TK))
    e_pad = _round_up(e, _TE)
    fp = _round_up(f, _LANE)
    hp = _round_up(h, _LANE)
    cp = _round_up(c, _LANE)

    src = edge_index[0]
    dst = edge_index[1]

    # Dense row-normalised adjacency (mean aggregation), padded, stored bf16.
    # TODO(synk): the scatter-add adjacency/degree build and the per-edge
    # endpoint row gather below remain plain-JAX glue (data-dependent
    # scatter/gather); only the dense math runs inside the Pallas kernels.
    adj = jnp.zeros((n_pad, n_pad), jnp.float32).at[dst, src].add(1.0)
    deg = jnp.sum(adj, axis=1, keepdims=True)
    adj = (adj / jnp.maximum(deg, 1.0)).astype(jnp.bfloat16)

    x_p = _pad2(x, n_pad, fp)

    wl1 = _pad2(params["wl1"], fp, hp)
    wr1 = _pad2(params["wr1"], fp, hp)
    b1 = _pad2(params["b1"], 1, hp)
    wl2 = _pad2(params["wl2"], hp, hp)
    wr2 = _pad2(params["wr2"], hp, hp)
    b2 = _pad2(params["b2"], 1, hp)

    # fc1 weight split into the src / dst halves in the wrapper (no in-kernel
    # slicing across sublane tiles).
    w1s = _pad2(params["fc1_w"][:h], hp, hp)
    w1d = _pad2(params["fc1_w"][h:], hp, hp)
    fb1 = _pad2(params["fc1_b"], 1, hp)
    w2 = _pad2(params["fc2_w"], hp, cp)
    fb2 = _pad2(params["fc2_b"], 1, cp)

    h1 = _sage_layer(adj, x_p, wl1, wr1, b1)   # [n_pad, hp]
    h2 = _sage_layer(adj, h1, wl2, wr2, b2)    # [n_pad, hp]

    # Cheap O(E*H) endpoint row gather (replaces the old O(E*N) one-hot matmuls).
    src_p = jnp.pad(src, (0, e_pad - e))
    dst_p = jnp.pad(dst, (0, e_pad - e))
    e_src = jnp.take(h2, src_p, axis=0)
    e_dst = jnp.take(h2, dst_p, axis=0)

    out_p = _edge_head(e_src, e_dst, w1s, w1d, fb1, w2, fb2, c)
    return out_p[:e, :c]


# ---------------------------------------------------------------------------
# Parameter init + pure-JAX reference (PyG SAGEConv semantics).
# ---------------------------------------------------------------------------
def init_params(key, num_features, num_classes, hidden=16):
    ks = jax.random.split(key, 8)

    def u(k, shape, fan_in):
        bound = 1.0 / jnp.sqrt(jnp.float32(fan_in))
        return jax.random.uniform(k, shape, jnp.float32, -bound, bound)

    return {
        # SAGEConv1: lin_l (bias) on aggregated neighbours, lin_r (no bias) on root
        "wl1": u(ks[0], (num_features, hidden), num_features),
        "wr1": u(ks[1], (num_features, hidden), num_features),
        "b1": jnp.zeros((1, hidden), jnp.float32),
        # SAGEConv2
        "wl2": u(ks[2], (hidden, hidden), hidden),
        "wr2": u(ks[3], (hidden, hidden), hidden),
        "b2": jnp.zeros((1, hidden), jnp.float32),
        # fc1: Linear(2*hidden, hidden)
        "fc1_w": u(ks[4], (2 * hidden, hidden), 2 * hidden),
        "fc1_b": u(ks[5], (1, hidden), 2 * hidden),
        # fc2: Linear(hidden, num_classes)
        "fc2_w": u(ks[6], (hidden, num_classes), hidden),
        "fc2_b": u(ks[7], (1, num_classes), hidden),
    }


def reference_forward(x, edge_index, params):
    """Pure-JAX (full f32) reference implementing the PyG SAGEConv semantics."""
    n = x.shape[0]
    src, dst = edge_index[0], edge_index[1]

    def sage(h, wl, wr, b):
        msg = h[src]
        summed = jnp.zeros((n, h.shape[1]), h.dtype).at[dst].add(msg)
        cnt = jnp.zeros((n, 1), h.dtype).at[dst].add(1.0)
        agg = summed / jnp.maximum(cnt, 1.0)
        return jax.nn.relu(agg @ wl + b + h @ wr)

    h1 = sage(x, params["wl1"], params["wr1"], params["b1"])
    h2 = sage(h1, params["wl2"], params["wr2"], params["b2"])
    ef = jnp.concatenate([h2[src], h2[dst]], axis=1)
    ef = jax.nn.relu(ef @ params["fc1_w"] + params["fc1_b"])
    logits = ef @ params["fc2_w"] + params["fc2_b"]
    return jax.nn.log_softmax(logits, axis=1)


if __name__ == "__main__":
    key = jax.random.PRNGKey(0)
    k_x, k_e, k_p = jax.random.split(key, 3)

    N, F, C, E = 32, 8, 4, 64  # nodes, features, classes, edges
    x = jax.random.normal(k_x, (N, F), jnp.float32)
    edge_index = jax.random.randint(k_e, (2, E), 0, N, jnp.int32)
    params = init_params(k_p, F, C)

    out = graphsage2_forward(x, edge_index, params)
    out = jax.block_until_ready(out)

    ref = reference_forward(x, edge_index, params)
    assert out.shape == (E, C)
    # Tolerance loosened vs. the pure-f32 path because the mean-aggregation
    # matmuls run in bf16 (f32 accumulation), per the performance review.
    assert jnp.allclose(out, ref, atol=5e-2, rtol=5e-2), "mismatch vs reference"

    print("KERNEL_OK")
</pallas_src>

<mosaic_0001>
module attributes {stable_mosaic.version = 11 : i64} {
  func.func @_sage_layer_kernel(%arg0: i32, %arg1: i32, %arg2: memref<128x128xbf16, #tpu.memory_space<vmem>>, %arg3: memref<128x128xf32, #tpu.memory_space<vmem>>, %arg4: memref<128x128xf32, #tpu.memory_space<vmem>>, %arg5: memref<128x128xf32, #tpu.memory_space<vmem>>, %arg6: memref<128x128xf32, #tpu.memory_space<vmem>>, %arg7: memref<1x128xf32, #tpu.memory_space<vmem>>, %arg8: memref<128x128xf32, #tpu.memory_space<vmem>>, %arg9: memref<128x128xf32, #tpu.memory_space<vmem>>) attributes {dimension_semantics = [#tpu.dimension_semantics<parallel>, #tpu.dimension_semantics<arbitrary>], iteration_bounds = array<i64: 1, 1>, scalar_prefetch = 0 : i64, scratch_operands = 1 : i64, tpu.core_type = #tpu.core_type<tc>, window_params = [{transform_indices = @transform_0, window_bounds = array<i64: 128, 128>}, {transform_indices = @transform_1, window_bounds = array<i64: 128, 128>}, {transform_indices = @transform_2, window_bounds = array<i64: 128, 128>}, {pipeline_mode = #tpu.pipeline_mode<synchronous>, transform_indices = @transform_3, window_bounds = array<i64: 128, 128>}, {pipeline_mode = #tpu.pipeline_mode<synchronous>, transform_indices = @transform_4, window_bounds = array<i64: 128, 128>}, {pipeline_mode = #tpu.pipeline_mode<synchronous>, transform_indices = @transform_5, window_bounds = array<i64: 1, 128>}, {transform_indices = @transform_6, window_bounds = array<i64: 128, 128>}]} {
    %c0_i32 = arith.constant 0 : i32
    %0 = arith.cmpi eq, %arg1, %c0_i32 : i32
    %1 = arith.extui %0 : i1 to i32
    %c0_i32_0 = arith.constant 0 : i32
    %2 = arith.cmpi ne, %1, %c0_i32_0 : i32
    scf.if %2 {
      %cst_10 = arith.constant 0.000000e+00 : f32
      %13 = vector.broadcast %cst_10 : f32 to vector<128x128xf32>
      %c0_11 = arith.constant 0 : index
      %c0_12 = arith.constant 0 : index
      %14 = vector.load %arg9[%c0_11, %c0_12] : memref<128x128xf32, #tpu.memory_space<vmem>>, vector<128x128xf32>
      tpu.vector_store %arg9[%c0_11, %c0_12], %13 {strides = array<i32>} : memref<128x128xf32, #tpu.memory_space<vmem>>, vector<128x128xf32>,
    } else {
    }
    %c0 = arith.constant 0 : index
    %c0_1 = arith.constant 0 : index
    %3 = vector.load %arg9[%c0, %c0_1] : memref<128x128xf32, #tpu.memory_space<vmem>>, vector<128x128xf32>
    %c0_2 = arith.constant 0 : index
    %c0_3 = arith.constant 0 : index
    %4 = vector.load %arg2[%c0_2, %c0_3] : memref<128x128xbf16, #tpu.memory_space<vmem>>, vector<128x128xbf16>
    %c0_4 = arith.constant 0 : index
    %c0_5 = arith.constant 0 : index
    %5 = vector.load %arg3[%c0_4, %c0_5] : memref<128x128xf32, #tpu.memory_space<vmem>>, vector<128x128xf32>
    %6 = arith.truncf %5 : vector<128x128xf32> to vector<128x128xbf16>
    %cst = arith.constant dense<0.000000e+00> : vector<128x128xf32>
    %7 = tpu.matmul %4, %6, %cst {dimension_numbers = #tpu.dot_dimension_numbers<[1], [0], [0], [1], [0, 0, 1, 1], [], []>} : vector<128x128xbf16>, vector<128x128xbf16>, vector<128x128xf32> -> vector<128x128xf32>
    %8 = arith.addf %3, %7 : vector<128x128xf32>
    %c0_6 = arith.constant 0 : index
    %c0_7 = arith.constant 0 : index
    %9 = vector.load %arg9[%c0_6, %c0_7] : memref<128x128xf32, #tpu.memory_space<vmem>>, vector<128x128xf32>
    tpu.vector_store %arg9[%c0_6, %c0_7], %8 {strides = array<i32>} : memref<128x128xf32, #tpu.memory_space<vmem>>, vector<128x128xf32>,
    %c0_i32_8 = arith.constant 0 : i32
    %10 = arith.cmpi eq, %arg1, %c0_i32_8 : i32
    %11 = arith.extui %10 : i1 to i32
    %c0_i32_9 = arith.constant 0 : i32
    %12 = arith.cmpi ne, %11, %c0_i32_9 : i32
    scf.if %12 {
      %c0_10 = arith.constant 0 : index
      %c0_11 = arith.constant 0 : index
      %13 = vector.load %arg9[%c0_10, %c0_11] : memref<128x128xf32, #tpu.memory_space<vmem>>, vector<128x128xf32>
      %c0_12 = arith.constant 0 : index
      %c0_13 = arith.constant 0 : index
      %14 = vector.load %arg5[%c0_12, %c0_13] : memref<128x128xf32, #tpu.memory_space<vmem>>, vector<128x128xf32>
      %cst_14 = arith.constant dense<0.000000e+00> : vector<128x128xf32>
      %15 = tpu.matmul %13, %14, %cst_14 {dimension_numbers = #tpu.dot_dimension_numbers<[1], [0], [0], [1], [0, 0, 1, 1], [], []>} : vector<128x128xf32>, vector<128x128xf32>, vector<128x128xf32> -> vector<128x128xf32>
      %c0_15 = arith.constant 0 : index
      %c0_16 = arith.constant 0 : index
      %16 = vector.load %arg4[%c0_15, %c0_16] : memref<128x128xf32, #tpu.memory_space<vmem>>, vector<128x128xf32>
      %c0_17 = arith.constant 0 : index
      %c0_18 = arith.constant 0 : index
      %17 = vector.load %arg6[%c0_17, %c0_18] : memref<128x128xf32, #tpu.memory_space<vmem>>, vector<128x128xf32>
      %cst_19 = arith.constant dense<0.000000e+00> : vector<128x128xf32>
      %18 = tpu.matmul %16, %17, %cst_19 {dimension_numbers = #tpu.dot_dimension_numbers<[1], [0], [0], [1], [0, 0, 1, 1], [], []>} : vector<128x128xf32>, vector<128x128xf32>, vector<128x128xf32> -> vector<128x128xf32>
      %19 = arith.addf %15, %18 : vector<128x128xf32>
      %c0_20 = arith.constant 0 : index
      %c0_21 = arith.constant 0 : index
      %20 = vector.load %arg7[%c0_20, %c0_21] : memref<1x128xf32, #tpu.memory_space<vmem>>, vector<1x128xf32>
      %21 = vector.broadcast %20 : vector<1x128xf32> to vector<128x128xf32>
      %22 = arith.addf %19, %21 : vector<128x128xf32>
      %cst_22 = arith.constant 0.000000e+00 : f32
      %23 = vector.broadcast %cst_22 : f32 to vector<128x128xf32>
      %24 = arith.maximumf %22, %23 : vector<128x128xf32>
      %c0_23 = arith.constant 0 : index
      %c0_24 = arith.constant 0 : index
      %25 = vector.load %arg8[%c0_23, %c0_24] : memref<128x128xf32, #tpu.memory_space<vmem>>, vector<128x128xf32>
      tpu.vector_store %arg8[%c0_23, %c0_24], %24 {strides = array<i32>} : memref<128x128xf32, #tpu.memory_space<vmem>>, vector<128x128xf32>,
    } else {
    }
    return
  }
  func.func @transform_0(%arg0: i32, %arg1: i32) -> (i32, i32) {
    %c0_i32 = arith.constant 0 : i32
    return %arg0, %arg1 : i32, i32
  }
  func.func @transform_1(%arg0: i32, %arg1: i32) -> (i32, i32) {
    %c0_i32 = arith.constant 0 : i32
    %c0_i32_0 = arith.constant 0 : i32
    return %arg1, %c0_i32 : i32, i32
  }
  func.func @transform_2(%arg0: i32, %arg1: i32) -> (i32, i32) {
    %c0_i32 = arith.constant 0 : i32
    %c0_i32_0 = arith.constant 0 : i32
    return %arg0, %c0_i32 : i32, i32
  }
  func.func @transform_3(%arg0: i32, %arg1: i32) -> (i32, i32) {
    %c0_i32 = arith.constant 0 : i32
    %c0_i32_0 = arith.constant 0 : i32
    %c0_i32_1 = arith.constant 0 : i32
    return %c0_i32, %c0_i32_0 : i32, i32
  }
  func.func @transform_4(%arg0: i32, %arg1: i32) -> (i32, i32) {
    %c0_i32 = arith.constant 0 : i32
    %c0_i32_0 = arith.constant 0 : i32
    %c0_i32_1 = arith.constant 0 : i32
    return %c0_i32, %c0_i32_0 : i32, i32
  }
  func.func @transform_5(%arg0: i32, %arg1: i32) -> (i32, i32) {
    %c0_i32 = arith.constant 0 : i32
    %c0_i32_0 = arith.constant 0 : i32
    %c0_i32_1 = arith.constant 0 : i32
    return %c0_i32, %c0_i32_0 : i32, i32
  }
  func.func @transform_6(%arg0: i32, %arg1: i32) -> (i32, i32) {
    %c0_i32 = arith.constant 0 : i32
    %c0_i32_0 = arith.constant 0 : i32
    return %arg0, %c0_i32 : i32, i32
  }
}

</mosaic_0001>

<bundles_post_ra>
// kernel: tpu_custom_call.1
= control target key start
LH: loop header
LB: loop body
LE: loop exit
PB: predicated region body
PF: predicated region fallthrough
CT: control target
= control target key end

     0   :  { %11 = vsyncpa [#allocation4], 0  ;;  %s1293_s0 = inlined_call_operand.hbm [shape: bf16[128,128], index: 0, kind: input, shape index: {}]   ;;  %s1294_s1 = inlined_call_operand.hbm [shape: f32[128,128], index: 1, kind: input, shape index: {}]   ;;  %s1295_s2 = inlined_call_operand.hbm [shape: f32[128,128], index: 2, kind: input, shape index: {}]   ;;  %s1296_s3 = inlined_call_operand.hbm [shape: f32[128,128], index: 3, kind: input, shape index: {}]   ;;  %s1297_s4 = inlined_call_operand.hbm [shape: f32[128,128], index: 4, kind: input, shape index: {}]   ;;  %s1298_s5 = inlined_call_operand.vmem [shape: f32[1,128], index: 5, kind: input, shape index: {}]   ;;  %s1299_s6 = inlined_call_operand.hbm [shape: f32[128,128], index: 6, kind: output, shape index: {}]  }
   0x1   :  { %12 = vsyncpa [#allocation7], 0 }
   0x2   :  { %13 = vsyncpa [#allocation10], 0 }
   0x3   :  { %14 = vsyncpa [#allocation5], 0  ;;  %s1188_s21 = smov [#allocation6]  }
   0x4   :  { %s32_s22 = sshll.u32 %s1188_s21, 4  ;;  %s33_s22 = int_to_ptr.vmem [resolvable:$true] %s32_s22 }
   0x5   :  { %s1068_s23 = scalar_lea.vmem %s33_s22, 2048  ;;  %p1073_p1 = scmp.lt.s32.totalorder %s33_s22, %s33_s22 }
   0x6   :  { %p1069_p0 = scmp.ne.s32.totalorder %s33_s22, %s1068_s23  ;;  %p1074_p2 = scmp.lt.s32.totalorder %s1068_s23, %s1068_s23 }
   0x8   :  { %p1075_p3 = por %p1074_p2, %p1073_p1 }
   0xa   :  { %p1076_p4 = pnand %p1075_p3, %p1069_p0 }
   0xc   :  { %1079 = shalt.err (!%p1076_p4)
}
   0xd   :  { %s1189_s24 = smov 128   ;;  %s1190_s25 = smov 8  }
   0xe   :  { %38 = dma.hbm_to_vmem [thread:$0]  %s1294_s1, 2048, %s33_s22, [#allocation7], %s1189_s24, %s1189_s24, %s1190_s25  }
   0xf   :  { %s1191_s28 = smov [#allocation9]   ;;  %s1192_s30 = smov [#allocation3]  }
  0x10   :  { %s56_s29 = sshll.u32 %s1191_s28, 4  ;;  %s20_s7 = sshll.u32 %s1192_s30, 4  ;;  %s57_s29 = int_to_ptr.vmem [resolvable:$true] %s56_s29  ;;  %s21_s7 = int_to_ptr.vmem [resolvable:$true] %s20_s7 }
  0x11   :  { %s1088_s8 = scalar_lea.vmem %s57_s29, 2048  ;;  %p1093_p6 = scmp.lt.s32.totalorder %s57_s29, %s57_s29 }
  0x12   :  { %p1089_p5 = scmp.ne.s32.totalorder %s57_s29, %s1088_s8  ;;  %p1094_p7 = scmp.lt.s32.totalorder %s1088_s8, %s1088_s8 }
  0x14   :  { %p1095_p8 = por %p1094_p7, %p1093_p6 }
  0x16   :  { %p1096_p9 = pnand %p1095_p8, %p1089_p5 }
  0x18   :  { %1099 = shalt.err (!%p1096_p9)
}
  0x19   :  { %62 = dma.hbm_to_vmem [thread:$0]  %s1296_s3, 2048, %s57_s29, [#allocation10], %s1189_s24, %s1189_s24, %s1190_s25  }
  0x1a   :  { %s1108_s1 = scalar_lea.vmem %s21_s7, 1024  ;;  %p1113_p11 = scmp.lt.s32.totalorder %s21_s7, %s21_s7 }
  0x1b   :  { %p1109_p10 = scmp.ne.s32.totalorder %s21_s7, %s1108_s1  ;;  %p1114_p12 = scmp.lt.s32.totalorder %s1108_s1, %s1108_s1 }
  0x1d   :  { %p1115_p13 = por %p1114_p12, %p1113_p11 }
  0x1f   :  { %p1116_p0 = pnand %p1115_p13, %p1109_p10 }
  0x21   :  { %1119 = shalt.err (!%p1116_p0)
}
  0x22   :  { %s1193_s11 = smov 64   ;;  %s1194_s12 = smov 4  }
  0x23   :  { %26 = dma.hbm_to_vmem [thread:$0]  %s1293_s0, 1024, %s21_s7, [#allocation4], %s1193_s11, %s1193_s11, %s1194_s12  }
  0x24   :  { %s1195_s15 = smov [#allocation8]   ;;  %s1196_s17 = smov [#allocation11]  }
  0x25   :  { %s44_s16 = sshll.u32 %s1195_s15, 4  ;;  %s68_s18 = sshll.u32 %s1196_s17, 4  ;;  %s45_s16 = int_to_ptr.vmem [resolvable:$true] %s44_s16  ;;  %s69_s18 = int_to_ptr.vmem [resolvable:$true] %s68_s18 }
  0x26   :  { %s1128_s3 = scalar_lea.vmem %s45_s16, 2048  ;;  %p1133_p2 = scmp.lt.s32.totalorder %s45_s16, %s45_s16 }
  0x27   :  { %p1129_p1 = scmp.ne.s32.totalorder %s45_s16, %s1128_s3  ;;  %p1134_p3 = scmp.lt.s32.totalorder %s1128_s3, %s1128_s3 }
  0x29   :  { %p1135_p4 = por %p1134_p3, %p1133_p2 }
  0x2b   :  { %p1136_p5 = pnand %p1135_p4, %p1129_p1 }
  0x2d   :  { %1139 = shalt.err (!%p1136_p5)
}
  0x2e   :  { %50 = dma.hbm_to_vmem [thread:$0]  %s1295_s2, 2048, %s45_s16, [#allocation7], %s1189_s24, %s1189_s24, %s1190_s25  }
  0x2f   :  { %s1148_s0 = scalar_lea.vmem %s69_s18, 2048  ;;  %p1153_p7 = scmp.lt.s32.totalorder %s69_s18, %s69_s18 }
  0x30   :  { %p1149_p6 = scmp.ne.s32.totalorder %s69_s18, %s1148_s0  ;;  %p1154_p8 = scmp.lt.s32.totalorder %s1148_s0, %s1148_s0 }
  0x32   :  { %p1155_p9 = por %p1154_p8, %p1153_p7 }
  0x34   :  { %p1156_p10 = pnand %p1155_p9, %p1149_p6 }
  0x36   :  { %1159 = shalt.err (!%p1156_p10)
}
  0x37   :  { %74 = dma.hbm_to_vmem [thread:$0]  %s1297_s4, 2048, %s69_s18, [#allocation10], %s1189_s24, %s1189_s24, %s1190_s25  }
  0x38   :  { %1180 = dma.done.wait [#allocation4], 1024  }
  0x39   :  { %1181 = vsyncadd [#allocation4], 4294966272 }
  0x3a   :  { %1182 = dma.done.wait [#allocation7], 4096  }
  0x3b   :  { %1183 = vsyncadd [#allocation7], 4294963200 }
  0x3c   :  { %1184 = dma.done.wait [#allocation10], 4096  }
  0x3d   :  { %1185 = vsyncadd [#allocation10], 4294963200  ;;  %v159_v0 = vld [vmem:[#allocation6 + $0x70] sm:$0xff]  ;;  %v160_v1 = vld [vmem:[#allocation6 + $0x78] sm:$0xff] }
  0x3e   :  { %v157_v2 = vld [vmem:[#allocation6 + $0x60] sm:$0xff]  ;;  %v168_v3 = vpack.c.bf16 %v160_v1, %v159_v0  ;;  %v158_v4 = vld [vmem:[#allocation6 + $0x68] sm:$0xff]  ;;  %v155_v6 = vld [vmem:[#allocation6 + $0x50] sm:$0xff] }
  0x3f   :  { %v167_v5 = vpack.c.bf16 %v158_v4, %v157_v2  ;;  %v156_v7 = vld [vmem:[#allocation6 + $0x58] sm:$0xff]  ;;  %v153_v8 = vld [vmem:[#allocation6 + $0x40] sm:$0xff]  ;;  %v154_v10 = vld [vmem:[#allocation6 + $0x48] sm:$0xff] }
  0x40   :  { %866 = vmatprep.subr.bf16.mxu0 %v168_v3  ;;  %v166_v9 = vpack.c.bf16 %v156_v7, %v155_v6  ;;  %v1052_v11 = vld [vmem:[#allocation3] sm:$0xff]   ;;  %v165_v12 = vpack.c.bf16 %v154_v10, %v153_v8  ;;  %v151_v13 = vld [vmem:[#allocation6 + $0x30] sm:$0xff]  ;;  %v152_v14 = vld [vmem:[#allocation6 + $0x38] sm:$0xff] }
  0x41   :  { %867 = vmatpush3.bf16.msra.mxu0 %v168_v3  ;;  %882 = vmatprep.mubr.bf16.mxu0 %v1052_v11  ;;  %v164_v15 = vpack.c.bf16 %v152_v14, %v151_v13  ;;  %v412_v16 = vld [vmem:[#allocation11 + $0x78] sm:$0xff]  ;;  %v411_v17 = vld [vmem:[#allocation11 + $0x70] sm:$0xff]  ;;  %v149_v18 = vld [vmem:[#allocation6 + $0x20] sm:$0xff] }
  0x42   :  { %868 = vmatprep.subr.bf16.mxu0 %v167_v5  ;;  %v150_v19 = vld [vmem:[#allocation6 + $0x28] sm:$0xff]  ;;  %898 = vmatprep.subr.mxu1 %v412_v16  ;;  %v409_v22 = vld [vmem:[#allocation11 + $0x60] sm:$0xff]  ;;  %v147_v23 = vld [vmem:[#allocation6 + $0x10] sm:$0xff] }
  0x43   :  { %899 = vmatpush3.msra.mxu1 %v412_v16  ;;  %v410_v20 = vld [vmem:[#allocation11 + $0x68] sm:$0xff]  ;;  %v163_v21 = vpack.c.bf16 %v150_v19, %v149_v18  ;;  %v148_v24 = vld [vmem:[#allocation6 + $0x18] sm:$0xff]  ;;  %v407_v27 = vld [vmem:[#allocation11 + $0x50] sm:$0xff] }
  0x44   :  { %900 = vmatprep.subr.mxu1 %v411_v17  ;;  %v408_v25 = vld [vmem:[#allocation11 + $0x58] sm:$0xff]  ;;  %v162_v26 = vpack.c.bf16 %v148_v24, %v147_v23  ;;  %v381_v28 = vld [vmem:[#allocation8] sm:$0xff]  ;;  %v146_v30 = vld [vmem:[#allocation6 + $0x8] sm:$0xff] }
  0x45   :  { %869 = vmatpush3.bf16.msra.mxu0 %v167_v5  ;;  %901 = vmatpush3.msra.mxu1 %v411_v17  ;;  %v145_v29 = vld [vmem:[#allocation6] sm:$0xff]  ;;  %v406_v31 = vld [vmem:[#allocation11 + $0x48] sm:$0xff]  ;;  %v404_v34 = vld [vmem:[#allocation11 + $0x38] sm:$0xff] }
  0x46   :  { %870 = vmatprep.subr.bf16.mxu0 %v166_v9  ;;  %902 = vmatprep.subr.mxu1 %v410_v20  ;;  %v161_v32 = vpack.c.bf16 %v146_v30, %v145_v29  ;;  %v405_v33 = vld [vmem:[#allocation11 + $0x40] sm:$0xff]  ;;  %v403_v35 = vld [vmem:[#allocation11 + $0x30] sm:$0xff]  ;;  %v380_v36 = vld [vmem:[#allocation9 + $0x78] sm:$0xff] }
  0x47   :  { %903 = vmatpush3.msra.mxu1 %v410_v20  ;;  %930 = vmatprep.mubr.f32.mxu1 %v381_v28  ;;  %v1053_v37 = vld [vmem:[#allocation3 + $0x8] sm:$0xff]   ;;  %v1054_v39 = vld [vmem:[#allocation3 + $0x10] sm:$0xff]   ;;  %v401_v41 = vld [vmem:[#allocation11 + $0x20] sm:$0xff] }
  0x48   :  { %904 = vmatprep.subr.mxu1 %v409_v22  ;;  %v402_v38 = vld [vmem:[#allocation11 + $0x28] sm:$0xff]  ;;  %v379_v40 = vld [vmem:[#allocation9 + $0x70] sm:$0xff]  ;;  %v400_v43 = vld [vmem:[#allocation11 + $0x18] sm:$0xff] }
  0x49   :  { %871 = vmatpush3.bf16.msra.mxu0 %v166_v9  ;;  %905 = vmatpush3.msra.mxu1 %v409_v22  ;;  %v378_v42 = vld [vmem:[#allocation9 + $0x68] sm:$0xff]  ;;  %v1260_v44 = vld [vmem:[#allocation9 + $0x60] sm:$0xff]  ;;  %v399_v45 = vld [vmem:[#allocation11 + $0x10] sm:$0xff] }
  0x4a   :  { %872 = vmatprep.subr.bf16.mxu0 %v165_v12  ;;  %906 = vmatprep.subr.mxu1 %v408_v25  ;;  %v1055_v46 = vld [vmem:[#allocation3 + $0x18] sm:$0xff]   ;;  %v1056_v47 = vld [vmem:[#allocation3 + $0x20] sm:$0xff]   ;;  %v398_v49 = vld [vmem:[#allocation11 + $0x8] sm:$0xff] }
  0x4b   :  { %907 = vmatpush3.msra.mxu1 %v408_v25  ;;  %v376_v48 = vld [vmem:[#allocation9 + $0x58] sm:$0xff]  ;;  %v375_v50 = vld [vmem:[#allocation9 + $0x50] sm:$0xff]  ;;  %v397_v51 = vld [vmem:[#allocation11] sm:$0xff] }
  0x4c   :  { %908 = vmatprep.subr.mxu1 %v407_v27  ;;  %v374_v52 = vld [vmem:[#allocation9 + $0x48] sm:$0xff]  ;;  %v373_v54 = vld [vmem:[#allocation9 + $0x40] sm:$0xff]  ;;  %v1058_v56 = vld [vmem:[#allocation3 + $0x30] sm:$0xff]  }
  0x4d   :  { %873 = vmatpush3.bf16.msra.mxu0 %v165_v12  ;;  %909 = vmatpush3.msra.mxu1 %v407_v27  ;;  %v382_v53 = vld [vmem:[#allocation8 + $0x8] sm:$0xff]  ;;  %v372_v57 = vld [vmem:[#allocation9 + $0x38] sm:$0xff]  ;;  %v383_v58 = vld [vmem:[#allocation8 + $0x10] sm:$0xff] }
  0x4e   :  { %874 = vmatprep.subr.bf16.mxu0 %v164_v15  ;;  %910 = vmatprep.subr.mxu1 %v406_v31  ;;  %v1057_v55 = vld [vmem:[#allocation3 + $0x28] sm:$0xff]   ;;  %v384_v59 = vld [vmem:[#allocation8 + $0x18] sm:$0xff]  ;;  %v371_v60 = vld [vmem:[#allocation9 + $0x30] sm:$0xff] }
  0x4f   :  { %911 = vmatpush3.msra.mxu1 %v406_v31  ;;  %v370_v61 = vld [vmem:[#allocation9 + $0x28] sm:$0xff]  ;;  %v1059_v62 = vld [vmem:[#allocation3 + $0x38] sm:$0xff]   ;;  %v385_v63 = vld [vmem:[#allocation8 + $0x20] sm:$0xff] }
  0x50   :  { %912 = vmatprep.subr.mxu1 %v405_v33  ;;  %v386_v0 = vld [vmem:[#allocation8 + $0x28] sm:$0xff]  ;;  %v369_v1 = vld [vmem:[#allocation9 + $0x20] sm:$0xff]  ;;  %v368_v2 = vld [vmem:[#allocation9 + $0x18] sm:$0xff] }
  0x51   :  { %875 = vmatpush3.bf16.msra.mxu0 %v164_v15  ;;  %913 = vmatpush3.msra.mxu1 %v405_v33  ;;  %v387_v3 = vld [vmem:[#allocation8 + $0x30] sm:$0xff]  ;;  %v388_v4 = vld [vmem:[#allocation8 + $0x38] sm:$0xff]  ;;  %v366_v6 = vld [vmem:[#allocation9 + $0x8] sm:$0xff] }
  0x52   :  { %876 = vmatprep.subr.bf16.mxu0 %v163_v21  ;;  %914 = vmatprep.subr.mxu1 %v404_v34  ;;  %v367_v5 = vld [vmem:[#allocation9 + $0x10] sm:$0xff]  ;;  %v389_v7 = vld [vmem:[#allocation8 + $0x40] sm:$0xff]  ;;  %v390_v8 = vld [vmem:[#allocation8 + $0x48] sm:$0xff] }
  0x53   :  { %915 = vmatpush3.msra.mxu1 %v404_v34  ;;  %v365_v9 = vld [vmem:[#allocation9] sm:$0xff]  ;;  %v391_v10 = vld [vmem:[#allocation8 + $0x50] sm:$0xff]  ;;  %v392_v11 = vld [vmem:[#allocation8 + $0x58] sm:$0xff] }
  0x54   :  { %916 = vmatprep.subr.mxu1 %v403_v35  ;;  %v393_v12 = vld [vmem:[#allocation8 + $0x60] sm:$0xff]  ;;  %v394_v13 = vld [vmem:[#allocation8 + $0x68] sm:$0xff]  ;;  %v395_v14 = vld [vmem:[#allocation8 + $0x70] sm:$0xff] }
  0x55   :  { %877 = vmatpush3.bf16.msra.mxu0 %v163_v21  ;;  %917 = vmatpush3.msra.mxu1 %v403_v35  ;;  %v396_v15 = vld [vmem:[#allocation8 + $0x78] sm:$0xff] }
  0x56   :  { %878 = vmatprep.subr.bf16.mxu0 %v162_v26  ;;  %918 = vmatprep.subr.mxu1 %v402_v38 }
  0x57   :  { %919 = vmatpush3.msra.mxu1 %v402_v38 }
  0x58   :  { %920 = vmatprep.subr.mxu1 %v401_v41 }
  0x59   :  { %879 = vmatpush3.bf16.msra.mxu0 %v162_v26  ;;  %921 = vmatpush3.msra.mxu1 %v401_v41 }
  0x5a   :  { %880 = vmatprep.subr.bf16.mxu0 %v161_v32  ;;  %922 = vmatprep.subr.mxu1 %v400_v43 }
  0x5b   :  { %923 = vmatpush3.msra.mxu1 %v400_v43 }
  0x5c   :  { %924 = vmatprep.subr.mxu1 %v399_v45 }
  0x5d   :  { %881 = vmatpush3.bf16.msra.mxu0 %v161_v32  ;;  %925 = vmatpush3.msra.mxu1 %v399_v45  ;;  %v1269_v45 = vld [vmem:[%s1298_s5] ss:$0 sm:$0xff]  ;;  %s1197_s5 = smov [#allocation12]  }
  0x5e   :  { %954 = vmatprep.subr.mxu0 %v380_v36  ;;  %926 = vmatprep.subr.mxu1 %v398_v49  ;;  %s763_s23 = sshll.u32 %s1197_s5, 4  ;;  %s764_s23 = int_to_ptr.vmem [resolvable:$true] %s763_s23 }
  0x5f   :  { %927 = vmatpush3.msra.mxu1 %v398_v49  ;;  %s1160_s26 = scalar_lea.vmem %s764_s23, 2048  ;;  %p1165_p12 = scmp.lt.s32.totalorder %s764_s23, %s764_s23 }
  0x60   :  { %883 = vmatmul.mubr.bf16.vlgmr.msra.gmra.mxu0 %v1053_v37  ;;  %928 = vmatprep.subr.mxu1 %v397_v51  ;;  %p1161_p11 = scmp.ne.s32.totalorder %s764_s23, %s1160_s26  ;;  %p1166_p13 = scmp.lt.s32.totalorder %s1160_s26, %s1160_s26 }
  0x61   :  { %886 = vmatprep.mubr.bf16.mxu0 %v1054_v39  ;;  %955 = vmatpush3.msra.mxu0 %v380_v36 }
  0x62   :  { %956 = vmatprep.subr.mxu0 %v379_v40  ;;  %929 = vmatpush3.msra.mxu1 %v397_v51  ;;  %p1167_p0 = por %p1166_p13, %p1165_p12 }
  0x63   :  { %957 = vmatpush3.msra.mxu0 %v379_v40  ;;  %931 = vmatmul.mubr.f32.vlgmr.msra.gmra.mxu1 %v382_v53 }
  0x64   :  { %958 = vmatprep.subr.mxu0 %v378_v42  ;;  %1010 = vmatprep.subr.mxu1 %v380_v36  ;;  %p1168_p1 = pnand %p1167_p0, %p1161_p11 }
  0x65   :  { %959 = vmatpush3.msra.mxu0 %v378_v42  ;;  %1026 = vmatpush3.msra.mxu1 %v380_v36 }
  0x66   :  { %960 = vmatprep.subr.mxu0 %v1260_v44  ;;  %933 = vmatprep.mubr.f32.mxu1 %v383_v58 }
  0x67   :  { %961 = vmatpush3.msra.mxu0 %v1260_v44  ;;  %1011 = vmatprep.subr.mxu1 %v379_v40 }
  0x68   :  { %887 = vmatmul.mubr.bf16.gmra.mxu0 %v1055_v46  ;;  %962 = vmatprep.subr.mxu0 %v376_v48 }
  0x69   :  { %890 = vmatprep.mubr.bf16.mxu0 %v1056_v47  ;;  %963 = vmatpush3.msra.mxu0 %v376_v48 }
  0x6a   :  { %964 = vmatprep.subr.mxu0 %v375_v50  ;;  %934 = vmatmul.mubr.f32.gmra.mxu1 %v384_v59 }
  0x6b   :  { %965 = vmatpush3.msra.mxu0 %v375_v50  ;;  %1027 = vmatpush3.msra.mxu1 %v379_v40 }
  0x6c   :  { %966 = vmatprep.subr.mxu0 %v374_v52  ;;  %1012 = vmatprep.subr.mxu1 %v378_v42 }
  0x6d   :  { %967 = vmatpush3.msra.mxu0 %v374_v52  ;;  %1028 = vmatpush3.msra.mxu1 %v378_v42 }
  0x6e   :  { %968 = vmatprep.subr.mxu0 %v373_v54  ;;  %936 = vmatprep.mubr.f32.mxu1 %v385_v63 }
  0x6f   :  { %969 = vmatpush3.msra.mxu0 %v373_v54  ;;  %1013 = vmatprep.subr.mxu1 %v1260_v44 }
  0x70   :  { %891 = vmatmul.mubr.bf16.gmra.mxu0 %v1057_v55  ;;  %970 = vmatprep.subr.mxu0 %v372_v57 }
  0x71   :  { %894 = vmatprep.mubr.bf16.mxu0 %v1058_v56  ;;  %971 = vmatpush3.msra.mxu0 %v372_v57 }
  0x72   :  { %972 = vmatprep.subr.mxu0 %v371_v60  ;;  %937 = vmatmul.mubr.f32.gmra.mxu1 %v386_v0 }
  0x73   :  { %973 = vmatpush3.msra.mxu0 %v371_v60  ;;  %1029 = vmatpush3.msra.mxu1 %v1260_v44 }
  0x74   :  { %974 = vmatprep.subr.mxu0 %v370_v61  ;;  %1014 = vmatprep.subr.mxu1 %v376_v48 }
  0x75   :  { %975 = vmatpush3.msra.mxu0 %v370_v61  ;;  %1030 = vmatpush3.msra.mxu1 %v376_v48 }
  0x76   :  { %976 = vmatprep.subr.mxu0 %v369_v1  ;;  %1015 = vmatprep.subr.mxu1 %v375_v50 }
  0x77   :  { %977 = vmatpush3.msra.mxu0 %v369_v1  ;;  %1031 = vmatpush3.msra.mxu1 %v375_v50 }
  0x78   :  { %895 = vmatmul.mubr.bf16.gmra.mxu0 %v1059_v62  ;;  %978 = vmatprep.subr.mxu0 %v368_v2 }
  0x79   :  { %979 = vmatpush3.msra.mxu0 %v368_v2  ;;  %1016 = vmatprep.subr.mxu1 %v374_v52 }
  0x7a   :  { %1032 = vmatpush3.msra.mxu1 %v374_v52  ;;  %939 = vmatprep.mubr.f32.mxu1 %v387_v3 }
  0x7b   :  { %1017 = vmatprep.subr.mxu1 %v373_v54  ;;  %940 = vmatmul.mubr.f32.gmra.mxu1 %v388_v4 }
  0x7c   :  { %1033 = vmatpush3.msra.mxu1 %v373_v54  ;;  %980 = vmatprep.subr.mxu0 %v367_v5 }
  0x7d   :  { %1018 = vmatprep.subr.mxu1 %v372_v57  ;;  %981 = vmatpush3.msra.mxu0 %v367_v5 }
  0x7e   :  { %1034 = vmatpush3.msra.mxu1 %v372_v57  ;;  %982 = vmatprep.subr.mxu0 %v366_v6 }
  0x7f   :  { %1019 = vmatprep.subr.mxu1 %v371_v60  ;;  %942 = vmatprep.mubr.f32.mxu1 %v389_v7 }
  0x80   :  { %1035 = vmatpush3.msra.mxu1 %v371_v60  ;;  %983 = vmatpush3.msra.mxu0 %v366_v6 }
  0x81   :  { %1020 = vmatprep.subr.mxu1 %v370_v61  ;;  %943 = vmatmul.mubr.f32.gmra.mxu1 %v390_v8 }
  0x82   :  { %1036 = vmatpush3.msra.mxu1 %v370_v61  ;;  %984 = vmatprep.subr.mxu0 %v365_v9 }
  0x83   :  { %1021 = vmatprep.subr.mxu1 %v369_v1  ;;  %985 = vmatpush3.msra.mxu0 %v365_v9 }
  0x84   :  { %1037 = vmatpush3.msra.mxu1 %v369_v1  ;;  %945 = vmatprep.mubr.f32.mxu1 %v391_v10 }
  0x85   :  { %1022 = vmatprep.subr.mxu1 %v368_v2  ;;  %946 = vmatmul.mubr.f32.gmra.mxu1 %v392_v11 }
  0x86   :  { %1038 = vmatpush3.msra.mxu1 %v368_v2  ;;  %948 = vmatprep.mubr.f32.mxu1 %v393_v12 }
  0x87   :  { %1023 = vmatprep.subr.mxu1 %v367_v5 }
  0x88   :  { %1039 = vmatpush3.msra.mxu1 %v367_v5 }
  0x89   :  { %1024 = vmatprep.subr.mxu1 %v366_v6  ;;  %949 = vmatmul.mubr.f32.gmra.mxu1 %v394_v13 }
  0x8a   :  { %1040 = vmatpush3.msra.mxu1 %v366_v6  ;;  %951 = vmatprep.mubr.f32.mxu1 %v395_v14 }
  0x8b   :  { %1025 = vmatprep.subr.mxu1 %v365_v9 }
  0x8c   :  { %1041 = vmatpush3.msra.mxu1 %v365_v9 }
  0x8d   :  { %952 = vmatmul.mubr.f32.gmra.mxu1 %v396_v15 }
 0x120   :  { %v884_v16 = vpop.f32.mrf.mxu0 }
 0x122   :  { %v251_v17 = vpop.f32.mrf.mxu0 }
 0x123   :  { %986 = vmatprep.mubr.f32.mxu0 %v251_v17  ;;  %v932_v32 = vpop.f32.mrf.mxu1 }
 0x124   :  { %v885_v18 = vpop.f32.mrf.mxu0 }
 0x125   :  { %v479_v33 = vpop.f32.mrf.mxu1 }
 0x126   :  { %v254_v19 = vpop.f32.mrf.mxu0 }
 0x127   :  { %987 = vmatmul.mubr.f32.vlgmr.msra.gmra.mxu0 %v254_v19 }
 0x128   :  { %v888_v20 = vpop.f32.mrf.mxu0  ;;  %989 = vmatprep.mubr.f32.mxu0 %v884_v16 }
 0x12a   :  { %v267_v21 = vpop.f32.mrf.mxu0  ;;  %v935_v34 = vpop.f32.mrf.mxu1 }
 0x12b   :  { %990 = vmatmul.mubr.f32.gmra.mxu0 %v885_v18 }
 0x12c   :  { %v889_v22 = vpop.f32.mrf.mxu0  ;;  %992 = vmatprep.mubr.f32.mxu0 %v267_v21  ;;  %v489_v35 = vpop.f32.mrf.mxu1 }
 0x12e   :  { %v270_v23 = vpop.f32.mrf.mxu0 }
 0x12f   :  { %993 = vmatmul.mubr.f32.gmra.mxu0 %v270_v23 }
 0x130   :  { %v892_v24 = vpop.f32.mrf.mxu0  ;;  %995 = vmatprep.mubr.f32.mxu0 %v888_v20 }
 0x132   :  { %v283_v25 = vpop.f32.mrf.mxu0  ;;  %v938_v36 = vpop.f32.mrf.mxu1 }
 0x133   :  { %996 = vmatmul.mubr.f32.gmra.mxu0 %v889_v22  ;;  %998 = vmatprep.mubr.f32.mxu1 %v283_v25 }
 0x134   :  { %v893_v26 = vpop.f32.mrf.mxu0  ;;  %v499_v37 = vpop.f32.mrf.mxu1 }
 0x136   :  { %v286_v27 = vpop.f32.mrf.mxu0 }
 0x137   :  { %999 = vmatmul.mubr.f32.vlgmr.msra.gmra.mxu1 %v286_v27 }
 0x138   :  { %v896_v28 = vpop.f32.mrf.mxu0  ;;  %1001 = vmatprep.mubr.f32.mxu1 %v892_v24 }
 0x13a   :  { %v299_v29 = vpop.f32.mrf.mxu0 }
 0x13b   :  { %1002 = vmatmul.mubr.f32.gmra.mxu1 %v893_v26  ;;  %v941_v38 = vpop.f32.mrf.mxu1 }
 0x13c   :  { %v897_v30 = vpop.f32.mrf.mxu0  ;;  %1004 = vmatprep.mubr.f32.mxu1 %v299_v29 }
 0x13d   :  { %v509_v39 = vpop.f32.mrf.mxu1 }
 0x13e   :  { %v302_v31 = vpop.f32.mrf.mxu0 }
 0x13f   :  { %1005 = vmatmul.mubr.f32.gmra.mxu1 %v302_v31 }
 0x140   :  { %1007 = vmatprep.mubr.f32.mxu1 %v896_v28 }
 0x141   :  { %v944_v40 = vpop.f32.mrf.mxu1 }
 0x143   :  { %1008 = vmatmul.mubr.f32.gmra.mxu1 %v897_v30  ;;  %v519_v41 = vpop.f32.mrf.mxu1 }
 0x145   :  { %v947_v42 = vpop.f32.mrf.mxu1 }
 0x147   :  { %v529_v43 = vpop.f32.mrf.mxu1 }
 0x149   :  { %v950_v48 = vpop.f32.mrf.mxu1 }
 0x14b   :  { %v539_v56 = vpop.f32.mrf.mxu1 }
 0x14d   :  { %v953_v0 = vpop.f32.mrf.mxu1 }
 0x14f   :  { %v549_v9 = vpop.f32.mrf.mxu1 }
 0x1e7   :  { %v988_v44 = vpop.f32.mrf.mxu0 }
 0x1e8   :  { %v630_v46 = vadd.f32 %v988_v44, %v932_v32 }
 0x1e9   :  { %v624_v47 = vpop.f32.mrf.mxu0 }
 0x1ea   :  { %v711_v49 = vadd.f32 %v1269_v45, %v630_v46  ;;  %v625_v50 = vadd.f32 %v624_v47, %v479_v33 }
 0x1eb   :  { %v991_v51 = vpop.f32.mrf.mxu0 }
 0x1ec   :  { %v727_v52 = vmax.f32 %v711_v49, 0.0  ;;  %v710_v53 = vadd.f32 %v1269_v45, %v625_v50  ;;  %v640_v54 = vadd.f32 %v991_v51, %v935_v34 }
 0x1ed   :  { %v634_v55 = vpop.f32.mrf.mxu0 }
 0x1ee   :  { %743 = vst [vmem:[#allocation12 + $0x8] sm:$0xff] %v727_v52  ;;  %v726_v57 = vmax.f32 %v710_v53, 0.0  ;;  %v713_v58 = vadd.f32 %v1269_v45, %v640_v54  ;;  %v635_v59 = vadd.f32 %v634_v55, %v489_v35 }
 0x1ef   :  { %v994_v60 = vpop.f32.mrf.mxu0 }
 0x1f0   :  { %742 = vst [vmem:[#allocation12] sm:$0xff] %v726_v57  ;;  %v729_v61 = vmax.f32 %v713_v58, 0.0  ;;  %v712_v62 = vadd.f32 %v1269_v45, %v635_v59  ;;  %v650_v63 = vadd.f32 %v994_v60, %v938_v36 }
 0x1f1   :  { %v644_v1 = vpop.f32.mrf.mxu0 }
 0x1f2   :  { %745 = vst [vmem:[#allocation12 + $0x18] sm:$0xff] %v729_v61  ;;  %v728_v2 = vmax.f32 %v712_v62, 0.0  ;;  %v715_v3 = vadd.f32 %v1269_v45, %v650_v63  ;;  %v645_v4 = vadd.f32 %v644_v1, %v499_v37 }
 0x1f3   :  { %v997_v5 = vpop.f32.mrf.mxu0 }
 0x1f4   :  { %744 = vst [vmem:[#allocation12 + $0x10] sm:$0xff] %v728_v2  ;;  %v731_v6 = vmax.f32 %v715_v3, 0.0  ;;  %v714_v7 = vadd.f32 %v1269_v45, %v645_v4  ;;  %v660_v8 = vadd.f32 %v997_v5, %v941_v38 }
 0x1f5   :  { %v654_v10 = vpop.f32.mrf.mxu0 }
 0x1f6   :  { %747 = vst [vmem:[#allocation12 + $0x28] sm:$0xff] %v731_v6  ;;  %v730_v11 = vmax.f32 %v714_v7, 0.0  ;;  %v717_v12 = vadd.f32 %v1269_v45, %v660_v8  ;;  %v655_v13 = vadd.f32 %v654_v10, %v509_v39 }
 0x1f7   :  { %v1000_v14 = vpop.f32.mrf.mxu1 }
 0x1f8   :  { %746 = vst [vmem:[#allocation12 + $0x20] sm:$0xff] %v730_v11  ;;  %v733_v15 = vmax.f32 %v717_v12, 0.0  ;;  %v716_v16 = vadd.f32 %v1269_v45, %v655_v13  ;;  %v670_v17 = vadd.f32 %v1000_v14, %v944_v40 }
 0x1f9   :  { %v664_v18 = vpop.f32.mrf.mxu1 }
 0x1fa   :  { %749 = vst [vmem:[#allocation12 + $0x38] sm:$0xff] %v733_v15  ;;  %v732_v19 = vmax.f32 %v716_v16, 0.0  ;;  %v719_v20 = vadd.f32 %v1269_v45, %v670_v17  ;;  %v665_v21 = vadd.f32 %v664_v18, %v519_v41 }
 0x1fb   :  { %v1003_v22 = vpop.f32.mrf.mxu1 }
 0x1fc   :  { %748 = vst [vmem:[#allocation12 + $0x30] sm:$0xff] %v732_v19  ;;  %v735_v23 = vmax.f32 %v719_v20, 0.0  ;;  %v718_v24 = vadd.f32 %v1269_v45, %v665_v21  ;;  %v680_v25 = vadd.f32 %v1003_v22, %v947_v42 }
 0x1fd   :  { %v674_v26 = vpop.f32.mrf.mxu1 }
 0x1fe   :  { %751 = vst [vmem:[#allocation12 + $0x48] sm:$0xff] %v735_v23  ;;  %v734_v27 = vmax.f32 %v718_v24, 0.0  ;;  %v721_v28 = vadd.f32 %v1269_v45, %v680_v25  ;;  %v675_v29 = vadd.f32 %v674_v26, %v529_v43 }
 0x1ff   :  { %v1006_v30 = vpop.f32.mrf.mxu1 }
 0x200   :  { %750 = vst [vmem:[#allocation12 + $0x40] sm:$0xff] %v734_v27  ;;  %v737_v31 = vmax.f32 %v721_v28, 0.0  ;;  %v720_v32 = vadd.f32 %v1269_v45, %v675_v29  ;;  %v690_v33 = vadd.f32 %v1006_v30, %v950_v48 }
 0x201   :  { %v684_v34 = vpop.f32.mrf.mxu1 }
 0x202   :  { %753 = vst [vmem:[#allocation12 + $0x58] sm:$0xff] %v737_v31  ;;  %v736_v35 = vmax.f32 %v720_v32, 0.0  ;;  %v723_v36 = vadd.f32 %v1269_v45, %v690_v33  ;;  %v685_v37 = vadd.f32 %v684_v34, %v539_v56 }
 0x203   :  { %v1009_v38 = vpop.f32.mrf.mxu1 }
 0x204   :  { %752 = vst [vmem:[#allocation12 + $0x50] sm:$0xff] %v736_v35  ;;  %v739_v39 = vmax.f32 %v723_v36, 0.0  ;;  %v722_v40 = vadd.f32 %v1269_v45, %v685_v37  ;;  %v700_v41 = vadd.f32 %v1009_v38, %v953_v0 }
 0x205   :  { %v694_v42 = vpop.f32.mrf.mxu1 }
 0x206   :  { %755 = vst [vmem:[#allocation12 + $0x68] sm:$0xff] %v739_v39  ;;  %v738_v43 = vmax.f32 %v722_v40, 0.0  ;;  %v725_v44 = vadd.f32 %v1269_v45, %v700_v41  ;;  %v695_v46 = vadd.f32 %v694_v42, %v549_v9 }
 0x208   :  { %754 = vst [vmem:[#allocation12 + $0x60] sm:$0xff] %v738_v43  ;;  %v741_v47 = vmax.f32 %v725_v44, 0.0  ;;  %v724_v48 = vadd.f32 %v1269_v45, %v695_v46 }
 0x20a   :  { %757 = vst [vmem:[#allocation12 + $0x78] sm:$0xff] %v741_v47  ;;  %v740_v49 = vmax.f32 %v724_v48, 0.0 }
 0x20c   :  { %756 = vst [vmem:[#allocation12 + $0x70] sm:$0xff] %v740_v49 }
 0x20d   :  { %1171 = shalt.err (!%p1168_p1)
}
 0x20e   :  { %769 = dma.vmem_to_hbm [thread:$0]  %s764_s23, 2048, %s1299_s6, [#allocation5], %s1189_s24, %s1189_s24, %s1190_s25  }
 0x20f   :  { %1186 = dma.done.wait [#allocation5], 2048  }
 0x210   :  { %1187 = vsyncadd [#allocation5], 4294965248 }
 0x211   :  { %773 = vsyncpa [#allocation4], 1 }
 0x212   :  { %774 = vsyncpa [#allocation7], 1 }
 0x213   :  { %775 = vsyncpa [#allocation10], 1 }
 0x214   :  { %776 = vsyncpa [#allocation5], 1 }

</bundles_post_ra>
